<compile_context>
chip_gen: v7x
topology: tpu7x:2x2x1
jax: 0.10.0
libtpu: 0.0.40
codegen_flags: <defaults>
</compile_context>

<pallas_src>
import jax
import jax.numpy as jnp
from jax.experimental import pallas as pl
from jax.experimental.pallas import tpu as pltpu


_IMAGENET_MEAN = (0.485, 0.456, 0.406)
_IMAGENET_STD = (0.229, 0.224, 0.225)

# ~2 MiB per block: with double-buffered input + output that is ~8 MiB of
# scoped VMEM, comfortably under every generation's default limit.
_TARGET_BLOCK_BYTES = 2 << 20


def _norm_kernel(scale_ref, shift_ref, x_ref, o_ref):
    # scale_ref / shift_ref: SMEM f32[3] scalar-prefetch args.
    # x_ref / o_ref: lane-dense VMEM tiles.
    c = pl.program_id(1)
    s = scale_ref[c]          # scalar loads, off the vector critical path
    b = shift_ref[c]
    o_ref[...] = x_ref[...] * s - b   # single fused scale/shift


def _choose_lane_tiling(plane_elems, dtype_bytes):
    """Pick (lane_width, rows, row_tile) for a flattened H*W plane.

    lane_width must divide plane_elems and be a multiple of 128 (unmasked
    full-width stores).  row_tile is either the full row count or a multiple
    of 8, keeping the per-block footprint <= _TARGET_BLOCK_BYTES.
    Returns None if the plane cannot be made lane-dense (fallback path).
    """
    lane_width = 0
    for cand in (2048, 1024, 512, 384, 256, 128):
        if plane_elems % cand == 0:
            lane_width = cand
            break
    if lane_width == 0:
        return None
    rows = plane_elems // lane_width
    max_rows = max(1, _TARGET_BLOCK_BYTES // (lane_width * dtype_bytes))
    if rows <= max_rows:
        row_tile = rows                      # full dim -> (8,128) rule satisfied
    else:
        # Largest multiple of 8 (<= max_rows) that divides rows, else 8
        # (a ragged last tile is fine for an elementwise op).
        row_tile = 8
        cand = 16
        while cand <= max_rows:
            if rows % cand == 0:
                row_tile = cand
            cand += 8
    return lane_width, rows, row_tile


def norm_layer(x, mean=None, std=None):
    """x: f32[N, 3, H, W] NCHW. Returns f32[N, 3, H, W] = ((x/255) - mean)/std."""
    if mean is None:
        mean = jnp.asarray(_IMAGENET_MEAN, dtype=jnp.float32)
    if std is None:
        std = jnp.asarray(_IMAGENET_STD, dtype=jnp.float32)

    N, C, H, W = x.shape

    # Fold normalization into one multiply-add per element.
    scale = (1.0 / (255.0 * std)).astype(jnp.float32)
    shift = (mean / std).astype(jnp.float32)

    plane = H * W
    tiling = _choose_lane_tiling(plane, x.dtype.itemsize)

    if tiling is None:
        # Fallback: H*W not a multiple of 128 -> process full (H, W) planes.
        # Correct (block dims equal the full array dims), just not lane-dense.
        grid = (N, C)
        in_spec = pl.BlockSpec((1, 1, H, W), lambda n, c, sc, sh: (n, c, 0, 0))
        out_spec = pl.BlockSpec((1, 1, H, W), lambda n, c, sc, sh: (n, c, 0, 0))
        dim_sem = ("parallel", "parallel")
        x_in = x
        out_struct = jax.ShapeDtypeStruct((N, C, H, W), x.dtype)
    else:
        lane_width, rows, row_tile = tiling
        # Contiguous row-major reshape: pure layout plumbing, no data movement.
        x_in = x.reshape(N, C, rows, lane_width)
        grid = (N, C, pl.cdiv(rows, row_tile))
        in_spec = pl.BlockSpec(
            (1, 1, row_tile, lane_width), lambda n, c, t, sc, sh: (n, c, t, 0))
        out_spec = pl.BlockSpec(
            (1, 1, row_tile, lane_width), lambda n, c, t, sc, sh: (n, c, t, 0))
        dim_sem = ("parallel", "parallel", "parallel")
        out_struct = jax.ShapeDtypeStruct((N, C, rows, lane_width), x.dtype)

    out = pl.pallas_call(
        _norm_kernel,
        out_shape=out_struct,
        grid_spec=pltpu.PrefetchScalarGridSpec(
            num_scalar_prefetch=2,
            grid=grid,
            in_specs=[in_spec],
            out_specs=out_spec,
        ),
        compiler_params=pltpu.CompilerParams(
            dimension_semantics=dim_sem,
        ),
        # NOTE: could add input_output_aliases={2: 0} to reuse x's HBM buffer
        # when the caller no longer needs x; left off so x stays valid here.
    )(scale, shift, x_in)

    return out.reshape(N, C, H, W)


if __name__ == "__main__":
    key = jax.random.PRNGKey(0)
    N, C, H, W = 2, 3, 16, 16  # C must be 3 to match the module's mean/std
    # Simulate uint8-range image data as float32.
    x = jax.random.uniform(key, (N, C, H, W), dtype=jnp.float32,
                           minval=0.0, maxval=255.0)

    mean = jnp.array(_IMAGENET_MEAN, dtype=jnp.float32)
    std = jnp.array(_IMAGENET_STD, dtype=jnp.float32)

    out = norm_layer(x)
    out = jax.block_until_ready(out)

    ref = (x / 255.0 - mean[None, :, None, None]) / std[None, :, None, None]
    assert out.shape == x.shape
    assert jnp.allclose(out, ref, atol=1e-5, rtol=1e-5)

    # Also exercise the fallback path (H*W not a multiple of 128).
    x2 = jax.random.uniform(jax.random.PRNGKey(0), (2, 3, 10, 13),
                            dtype=jnp.float32, minval=0.0, maxval=255.0)
    out2 = jax.block_until_ready(norm_layer(x2))
    ref2 = (x2 / 255.0 - mean[None, :, None, None]) / std[None, :, None, None]
    assert jnp.allclose(out2, ref2, atol=1e-5, rtol=1e-5)

    print("KERNEL_OK")
</pallas_src>

<mosaic_0001>
module attributes {stable_mosaic.version = 11 : i64} {
  func.func @_norm_kernel(%arg0: i32, %arg1: i32, %arg2: i32, %arg3: memref<3xf32, #tpu.memory_space<smem>>, %arg4: memref<3xf32, #tpu.memory_space<smem>>, %arg5: memref<1x1x1x256xf32, #tpu.memory_space<vmem>>, %arg6: memref<1x1x1x256xf32, #tpu.memory_space<vmem>>) attributes {dimension_semantics = [#tpu.dimension_semantics<parallel>, #tpu.dimension_semantics<parallel>, #tpu.dimension_semantics<parallel>], iteration_bounds = array<i64: 2, 3, 1>, scalar_prefetch = 2 : i64, scratch_operands = 0 : i64, tpu.core_type = #tpu.core_type<tc>, window_params = [{transform_indices = @transform_0, window_bounds = array<i64: 1, 1, 1, 256>}, {transform_indices = @transform_1, window_bounds = array<i64: 1, 1, 1, 256>}]} {
    %0 = arith.index_cast %arg1 : i32 to index
    %1 = memref.load %arg3[%0] : memref<3xf32, #tpu.memory_space<smem>>
    %2 = arith.index_cast %arg1 : i32 to index
    %3 = memref.load %arg4[%2] : memref<3xf32, #tpu.memory_space<smem>>
    %c0 = arith.constant 0 : index
    %c0_0 = arith.constant 0 : index
    %c0_1 = arith.constant 0 : index
    %c0_2 = arith.constant 0 : index
    %4 = vector.load %arg5[%c0, %c0_0, %c0_1, %c0_2] : memref<1x1x1x256xf32, #tpu.memory_space<vmem>>, vector<1x1x1x256xf32>
    %5 = vector.broadcast %1 : f32 to vector<1x1x1x256xf32>
    %6 = arith.mulf %4, %5 : vector<1x1x1x256xf32>
    %7 = vector.broadcast %3 : f32 to vector<1x1x1x256xf32>
    %8 = arith.subf %6, %7 : vector<1x1x1x256xf32>
    %c0_3 = arith.constant 0 : index
    %c0_4 = arith.constant 0 : index
    %c0_5 = arith.constant 0 : index
    %c0_6 = arith.constant 0 : index
    %9 = vector.load %arg6[%c0_3, %c0_4, %c0_5, %c0_6] : memref<1x1x1x256xf32, #tpu.memory_space<vmem>>, vector<1x1x1x256xf32>
    tpu.vector_store %arg6[%c0_3, %c0_4, %c0_5, %c0_6], %8 {strides = array<i32>} : memref<1x1x1x256xf32, #tpu.memory_space<vmem>>, vector<1x1x1x256xf32>,
    return
  }
  func.func @transform_0(%arg0: i32, %arg1: i32, %arg2: i32, %arg3: memref<3xf32, #tpu.memory_space<smem>>, %arg4: memref<3xf32, #tpu.memory_space<smem>>) -> (i32, i32, i32, i32) {
    %c0_i32 = arith.constant 0 : i32
    %c0_i32_0 = arith.constant 0 : i32
    return %arg0, %arg1, %arg2, %c0_i32 : i32, i32, i32, i32
  }
  func.func @transform_1(%arg0: i32, %arg1: i32, %arg2: i32, %arg3: memref<3xf32, #tpu.memory_space<smem>>, %arg4: memref<3xf32, #tpu.memory_space<smem>>) -> (i32, i32, i32, i32) {
    %c0_i32 = arith.constant 0 : i32
    %c0_i32_0 = arith.constant 0 : i32
    return %arg0, %arg1, %arg2, %c0_i32 : i32, i32, i32, i32
  }
}

</mosaic_0001>

<bundles_post_ra>
// kernel: tpu_custom_call.1
= control target key start
LH: loop header
LB: loop body
LE: loop exit
PB: predicated region body
PF: predicated region fallthrough
CT: control target
= control target key end

     0   :  { %s785_s0 = inlined_call_operand.hbm [shape: f32[3], index: 0, kind: input, shape index: {}]   ;;  %s786_s2 = inlined_call_operand.hbm [shape: f32[2,3,1,256], index: 2, kind: input, shape index: {}]   ;;  %s787_s3 = inlined_call_operand.hbm [shape: f32[2,3,1,256], index: 3, kind: output, shape index: {}]   ;;  %s788_s1 = inlined_call_operand.vmem [shape: f32[3], index: 1, kind: input, shape index: {}]  }
   0x1   :  { %s396_s14 = scalar_lea.hbm %s785_s0, 16 }
   0x2   :  { %p397_p0 = scmp.ne.s32.totalorder %s785_s0, %s396_s14  ;;  %p400_p1 = scmp.lt.u32.totalorder %s396_s14, %s785_s0 }
   0x4   :  { %p402_p2 = pnand %p400_p1, %p397_p0 }
   0x6   :  { %405 = shalt.err (!%p402_p2)  }
   0x7   :  { %s550_s19 = smov [#allocation3]   ;;  %s10_s24 = sshll.u32 %s788_s1, 4  ;;  %s11_s24 = int_to_ptr.vmem [resolvable:$true] %s10_s24 }
   0x8   :  { %9 = dma.hbm_to_smem %s785_s0, 16, %s550_s19, [#allocation2] }
   0x9   :  { %s406_s25 = scalar_lea.vmem %s11_s24, 16  ;;  %p411_p4 = scmp.lt.s32.totalorder %s11_s24, %s11_s24 }
   0xa   :  { %p407_p3 = scmp.ne.s32.totalorder %s11_s24, %s406_s25  ;;  %p412_p5 = scmp.lt.s32.totalorder %s406_s25, %s406_s25 }
   0xc   :  { %p413_p6 = por %p412_p5, %p411_p4 }
   0xe   :  { %p414_p7 = pnand %p413_p6, %p407_p3 }
  0x10   :  { %417 = shalt.err (!%p414_p7)  }
  0x11   :  { %s551_s26 = smov [#allocation4]  }
  0x12   :  { %13 = dma.vmem_to_smem %s11_s24, 16, %s551_s26, [#allocation2] }
  0x13   :  { %508 = dma.done.wait [#allocation2], 32 }
  0x14   :  { %509 = vsyncadd [#allocation2], 4294967264 }
  0x15   :  { %15 = sfence }
  0x16   :  { %16 = vsyncpa [#allocation6], 0 }
  0x17   :  { %18 = vsyncpa [#allocation6 + $0x1], 0 }
  0x18   :  { %19 = vsyncpa [#allocation7], 0 }
  0x19   :  { %21 = vsyncpa [#allocation7 + $0x1], 0  ;;  %s589_s0 = smov 0   ;;  %s591_s1 = smov 0  }
  0x1a   :  { %s593_s27 = smov 0   ;;  %s595_s28 = smov 0  }
  0x1b   :  { %s597_s29 = smov 0   ;;  %s599_s30 = smov 0  }
  0x1c   :  { %s601_s4 = smov 0   ;;  %s603_s5 = smov 0  }
  0x1d LB: > { %s299_s6 = sadd.s32 4294967295, %s548_s5   ;;  %s300_s7 = sadd.s32 4294967294, %s548_s5   ;;  %s548_s5 = sphi %s603_s5, %s27_s5   ;;  %s544_s4 = sphi %s601_s4, %s805_s4   ;;  %s540_s30 = sphi %s599_s30, %s804_s30   ;;  %s536_s29 = sphi %s597_s29, %s803_s29   ;;  %s532_s28 = sphi %s595_s28, %s802_s28   ;;  %s528_s27 = sphi %s593_s27, %s801_s27   ;;  %s524_s1 = sphi %s591_s1, %s800_s1   ;;  %s520_s0 = sphi %s589_s0, %s799_s0  }
  0x1e   : > { %s42_s8 = sadd.s32 1, %s540_s30  ;;  %s46_s9 = sadd.s32 1, %s544_s4 }
  0x1f   : > { %p44_p8 = scmp.ge.s32.totalorder %s42_s8, 3  ;;  %s57_s10 = sadd.s32 1, %s528_s27 }
  0x20   : > { %p64_p9 = scmp.ne.s32.totalorder %s528_s27, %s524_s1  ;;  %p65_p10 = scmp.eq.s32.totalorder %s548_s5, 0 }
  0x21   : > { %s807_s8 = smov (%p44_p8, %s42_s8), 0  ;;  %s809_s9 = smov (!%p44_p8, %s46_s9), %s544_s4 }
  0x22   : > { %s51_s11 = ssub.s32 %s540_s30, %s807_s8  ;;  %p642_p11 = por %p65_p10, %p64_p9 }
  0x23   : > { %p48_p12 = scmp.ge.s32.totalorder %s809_s9, 2  ;;  %p70_p13 = scmp.ne.s32.totalorder %s524_s1, %s520_s0 }
  0x24   : > { %p71_p0 = scmp.eq.s32.totalorder %s299_s6, 0  ;;  %p98_p1 = scmp.eq.s32.totalorder %s299_s6, 5 }
  0x25   : > { %s811_s9 = smov (%p48_p12, %s809_s9), 0  ;;  %p104_p4 = scmp.eq.s32.totalorder %s300_s7, 5 }
  0x26   : > { %p650_p2 = por %p71_p0, %p70_p13  ;;  %p654_p3 = por %p98_p1, %p64_p9 }
  0x27   : > { %s50_s15 = ssub.s32 %s544_s4, %s811_s9  ;;  %p660_p6 = por %p104_p4, %p70_p13 }
  0x28   : > { %s792_s14 = scalar_select %p654_p3, 1, 0 }
  0x29   : > { %s52_s16 = sor.u32 %s51_s11, %s50_s15  ;;  %p328_p7 = scmp.lt.s32.totalorder %s548_s5, 6 }
  0x2a   : > { %p55_p5 = scmp.eq.s32.totalorder %s52_s16, 0  ;;  %s124_s18 = sand.u32 1, %s528_s27  }
  0x2b   : > { %s793_s17 = scalar_select %p660_p6, 1, 0 }
  0x2c   : > { %s667_s19 = scalar_select %p55_p5, %s528_s27, %s57_s10  }
  0x2d   : > { %s303_s20 = sshll.u32 %s124_s18, 1  ;;  %s304_s21 = sshll.u32 %s540_s30, 1 }
  0x2e   : > { %s314_s22 = smul.u32 6, %s544_s4  ;;  %s128_s23 = scalar_lea.vmem [#allocation5], %s303_s20 }
  0x2f   : > { %s140_s24 = sshll.u32 %s128_s23, 4  ;;  %p675_p8 = pnand %p328_p7, %p642_p11  ;;  %s671_s24 = int_to_ptr.vmem [resolvable:$true] %s140_s24 }
  0x30   : > { %s136_s26 = sadd.s32 %s314_s22, %s304_s21  ;;  %s125_s12 = scalar_lea.sflag [#allocation6], %s124_s18 }
  0x31   : > { %s305_s6 = sshll.u32 %s136_s26, 4  ;;  %p420_p12 = pneg %p675_p8 }
  0x32   : > { %s683_s11 = scalar_lea.hbm %s786_s2, %s305_s6  ;;  %s423_s21 = scalar_lea.hbm %s786_s2, 192 }
  0x33   : > { %s418_s15 = scalar_lea.hbm %s683_s11, 32  ;;  %p424_p1 = scmp.lt.u32.totalorder %s683_s11, %s786_s2 }
  0x34   : > { %p419_p11 = scmp.ne.s32.totalorder %s683_s11, %s418_s15  ;;  %p425_p4 = scmp.lt.u32.totalorder %s423_s21, %s418_s15 }
  0x35   : > { %p427_p7 = scmp.lt.u32.totalorder %s418_s15, %s683_s11 }
  0x36   : > { %p421_p13 = pnand %p420_p12, %p419_p11  ;;  %p426_p5 = por %p425_p4, %p424_p1 }
  0x38   : > { %p422_p0 = pneg %p421_p13  ;;  %p428_p9 = por %p427_p7, %p426_p5 }
  0x3a   : > { %p429_p10 = pnand %p428_p9, %p422_p0 }
  0x3c   : > { %432 = shalt.err (!%p429_p10)
}
  0x3d   : > { %s433_s18 = scalar_lea.vmem %s671_s24, 32  ;;  %s552_s26 = smov [#allocation5]  }
  0x3e   : > { %p434_p11 = scmp.ne.s32.totalorder %s671_s24, %s433_s18  ;;  %s438_s6 = sshll.u32 %s552_s26, 4  ;;  %s439_s6 = int_to_ptr.vmem [resolvable:$false] %s438_s6 }
  0x3f   : > { %s440_s7 = scalar_lea.vmem %s439_s6, 64  ;;  %p441_p3 = scmp.lt.s32.totalorder %s671_s24, %s439_s6 }
  0x40   : > { %p436_p13 = pnand %p434_p11, %p420_p12  ;;  %p442_p1 = scmp.lt.s32.totalorder %s440_s7, %s433_s18 }
  0x42   : > { %p437_p6 = pneg %p436_p13  ;;  %p443_p4 = por %p442_p1, %p441_p3 }
  0x44   : > { %p444_p5 = pnand %p443_p4, %p437_p6 }
  0x46   : > { %447 = shalt.err (!%p444_p5)
}
  0x47   : > { %323 = dma.hbm_to_vmem [thread:$0]  (!%p675_p8), %s683_s11, 32, %s671_s24, %s125_s12  }
  0x48   : > { %p795_p9 = scmp.lt.s32.totalorder %s548_s5, 7  ;;  %p796_p10 = scmp.ge.s32.totalorder %s548_s5, 1 }
  0x4a   : > { %p146_p12 = pnand %p796_p10, %p795_p9 }
  0x4b   : > { %s716_s10 = sand.u32 (!%p146_p12), 1, %s524_s1  }
  0x4c   : > { %149 = sbr.rel (%p146_p12) target bundleno = 112 (0x70), region = 24  ;;  %s307_s15 = sshll.u32 (!%p146_p12), %s716_s10, 1 }
  0x4d   : > { %s152_s16 = scalar_lea.sflag (!%p146_p12), [#allocation6], %s716_s10  ;;  %s155_s20 = scalar_lea.vmem (!%p146_p12), [#allocation5], %s307_s15 }
  0x53   : > { %511 = dma.done.wait (%p650_p2), %s152_s16, 32  }
  0x54   : > { %513 = vsyncadd (%p650_p2), %s152_s16, 4294967264  ;;  %s174_s24 = sld [smem:[#allocation3 + %s532_s28]]  ;;  %s310_s11 = sshll.u32 %s532_s28, 1  ;;  %v181_v0 = vlaneseq  ;;  %v176_v1 = vld [vmem:[%s155_s20] sm:$0x3] }
  0x55   : > { %s175_s25 = sld [smem:[#allocation4 + %s532_s28]]  ;;  %s315_s12 = smul.u32 6, %s536_s29 }
  0x56   : > { %s173_s22 = scalar_lea.vmem [#allocation8], %s307_s15  ;;  %vm183_vm0 = vcmp.lt.s32.totalorder %v181_v0, 256  ;;  %s187_s29 = scalar_lea.sflag [#allocation7], %s716_s10 }
  0x57   : > { %s201_s21 = sadd.s32 %s315_s12, %s310_s11  ;;  %s205_s23 = sshll.u32 %s173_s22, 4  ;;  %s728_s23 = int_to_ptr.vmem [resolvable:$true] %s205_s23 }
  0x58   : > { %s311_s18 = sshll.u32 %s201_s21, 4  ;;  %s448_s6 = scalar_lea.vmem %s728_s23, 32 }
  0x59   : > { %s733_s28 = scalar_lea.hbm %s787_s3, %s311_s18  ;;  %p449_p2 = scmp.ne.s32.totalorder %s728_s23, %s448_s6 }
  0x5a   : > { %v177_v2 = vstv %s174_s24  ;;  %p797_p3 = scmp.ne.s32.totalorder %s792_s14, 0  ;;  %s553_s7 = smov [#allocation8]  }
  0x5b   : > { %v179_v3 = vstv %s175_s25  ;;  %v178_v4 = vmul.f32 %v177_v2, %v176_v1  ;;  %s452_s15 = sshll.u32 %s553_s7, 4  ;;  %s453_s15 = int_to_ptr.vmem [resolvable:$false] %s452_s15 }
  0x5c   : > { %p450_p6 = pnand %p449_p2, %p797_p3  ;;  %s454_s16 = scalar_lea.vmem %s453_s15, 64 }
  0x5d   : > { %v180_v5 = vsub.f32 %v178_v4, %v179_v3  ;;  %p455_p0 = scmp.lt.s32.totalorder %s728_s23, %s453_s15  ;;  %p456_p7 = scmp.lt.s32.totalorder %s454_s16, %s448_s6 }
  0x5e   : > { %p451_p8 = pneg %p450_p6 }
  0x5f   : > { %185 = vst.msk [vmem:[%s173_s22] sm:$0x3] %vm183_vm0, %v180_v5  ;;  %p457_p11 = por %p456_p7, %p455_p0 }
  0x61   : > { %p458_p13 = pnand %p457_p11, %p451_p8 }
  0x63   : > { %461 = shalt.err (!%p458_p13)
}
  0x64   : > { %s462_s10 = scalar_lea.hbm %s733_s28, 32  ;;  %s466_s25 = scalar_lea.hbm %s787_s3, 192 }
  0x65   : > { %p463_p1 = scmp.ne.s32.totalorder %s733_s28, %s462_s10  ;;  %p467_p9 = scmp.lt.u32.totalorder %s733_s28, %s787_s3 }
  0x66   : > { %p468_p10 = scmp.lt.u32.totalorder %s466_s25, %s462_s10  ;;  %p470_p2 = scmp.lt.u32.totalorder %s462_s10, %s733_s28 }
  0x67   : > { %p464_p4 = pnand %p463_p1, %p797_p3 }
  0x68   : > { %p469_p12 = por %p468_p10, %p467_p9 }
  0x69   : > { %p465_p5 = pneg %p464_p4 }
  0x6a   : > { %p471_p6 = por %p470_p2, %p469_p12 }
  0x6c   : > { %p472_p8 = pnand %p471_p6, %p465_p5 }
  0x6e   : > { %475 = shalt.err (!%p472_p8)
}
  0x6f   : > { %318 = dma.vmem_to_hbm [thread:$0]  (%p797_p3), %s728_s23, 32, %s733_s28, %s187_s29  }
  0x70 PF: > { %p329_p0 = scmp.ge.s32.totalorder %s548_s5, 2  ;;  %s217_s21 = sand.u32 1, %s520_s0  }
  0x71   : > { %p798_p7 = scmp.ne.s32.totalorder %s793_s17, 0  ;;  %s218_s22 = scalar_lea.sflag [#allocation7], %s217_s21 }
  0x73   : > { %p325_p11 = pnand %p329_p0, %p798_p7 }
  0x75   : > { %515 = dma.done.wait (!%p325_p11), %s218_s22, 32  }
  0x76   : > { %517 = vsyncadd (!%p325_p11), %s218_s22, 4294967264  ;;  %s27_s5 = sadd.s32 1, %s548_s5   ;;  %s799_s0 = smov %s524_s1 }
  0x77   : > { %p24_p13 = scmp.ge.s32.totalorder %s27_s5, 8   ;;  %s800_s1 = smov %s528_s27 }
  0x78   : > { %s801_s27 = smov %s667_s19  ;;  %s802_s28 = smov %s540_s30 }
  0x79   : > { %s803_s29 = smov %s544_s4  ;;  %s804_s30 = smov %s807_s8 }
  0x7a   : > { %s805_s4 = smov %s811_s9  ;;  %26 = sbr.rel (!%p24_p13) target bundleno = 29 (0x1d), region = 69 }
  0x81   :  { %223 = vsyncpa [#allocation6], 1 }
  0x82   :  { %225 = vsyncpa [#allocation6 + $0x1], 1 }
  0x83   :  { %226 = vsyncpa [#allocation7], 1 }
  0x84   :  { %228 = vsyncpa [#allocation7 + $0x1], 1 }

</bundles_post_ra>
